<compile_context>
chip_gen: v6e
topology: v6e:2x2x1
jax: 0.10.0
libtpu: 0.0.40
codegen_flags: <defaults>
</compile_context>

<pallas_src>
import jax
import jax.numpy as jnp
from jax.experimental import pallas as pl


def _round_up(v: int, m: int) -> int:
    return (v + m - 1) // m * m


def gcn_kernel(adj_ref, x_ref, w1_ref, b1_ref, w2_ref, b2_ref, o_ref):
    adj = adj_ref[...]                                             # (Np, Np)   bf16
    x = x_ref[...]                                                 # (Np, Fin)  bf16

    # ---- Layer 1: propagate (adj @ x), then project (@ W1 + b1), relu ----
    # F_in <= H, so propagating the narrower feature matrix first is the
    # cheaper association for layer 1.
    t = jnp.dot(adj, x, preferred_element_type=jnp.float32)        # (Np, Fin)  f32
    h = jnp.dot(t.astype(jnp.bfloat16), w1_ref[...],
                preferred_element_type=jnp.float32) + b1_ref[...]  # (Np, H)    f32
    h = jnp.maximum(h, 0.0)                                        # relu in f32

    # ---- Layer 2 (re-associated): project first, then propagate ----
    # adj @ (h @ W2) + b2 == (adj @ h) @ W2 + b2; the N^2 propagation now
    # only spans F_out columns.
    p = jnp.dot(h.astype(jnp.bfloat16), w2_ref[...],
                preferred_element_type=jnp.float32)                # (Np, Fout) f32
    out = jnp.dot(adj, p.astype(jnp.bfloat16),
                  preferred_element_type=jnp.float32) + b2_ref[...]

    o_ref[...] = out.astype(o_ref.dtype)


def gcn_forward(x, adj, w1, b1, w2, b2):
    n, f_in = x.shape
    h_dim = w1.shape[1]
    f_out = w2.shape[1]

    # Pad every dim to 128 so all kernel operands are full (8,128)-aligned,
    # lane-dense tiles (node dim appears as both a sublane and a lane/contraction
    # dim via adj, so it gets the 128 treatment too).  Still tiny (<200 KiB VMEM).
    n_pad = _round_up(max(n, 8), 128)
    f_in_pad = _round_up(f_in, 128)
    h_pad = _round_up(h_dim, 128)
    f_out_pad = _round_up(f_out, 128)

    def pad2(a, rows, cols):
        return jnp.pad(a, ((0, rows - a.shape[0]), (0, cols - a.shape[1])))

    adj_p = pad2(adj, n_pad, n_pad).astype(jnp.bfloat16)
    x_p = pad2(x, n_pad, f_in_pad).astype(jnp.bfloat16)
    w1_p = pad2(w1, f_in_pad, h_pad).astype(jnp.bfloat16)
    w2_p = pad2(w2, h_pad, f_out_pad).astype(jnp.bfloat16)
    b1_p = pad2(b1, 1, h_pad).astype(jnp.float32)
    b2_p = pad2(b2, 1, f_out_pad).astype(jnp.float32)

    full_spec = lambda a: pl.BlockSpec(a.shape, lambda: (0,) * a.ndim)

    out_p = pl.pallas_call(
        gcn_kernel,
        out_shape=jax.ShapeDtypeStruct((n_pad, f_out_pad), jnp.float32),
        in_specs=[
            full_spec(adj_p),
            full_spec(x_p),
            full_spec(w1_p),
            full_spec(b1_p),
            full_spec(w2_p),
            full_spec(b2_p),
        ],
        out_specs=pl.BlockSpec((n_pad, f_out_pad), lambda: (0, 0)),
    )(adj_p, x_p, w1_p, b1_p, w2_p, b2_p)

    # Strip padding.  Padded rows only ever hold bias values that real rows
    # never read (adj is zero in padded rows/columns), so the slice is exact.
    return out_p[:n, :f_out]


if __name__ == "__main__":
    num_nodes = 5
    in_features = 3
    hidden_features = 8
    out_features = 2

    key = jax.random.PRNGKey(0)
    k_x, k_w1, k_b1, k_w2, k_b2 = jax.random.split(key, 5)

    # Inputs (matching the PyTorch script: adj = I, x = rand(N, F_in)).
    x = jax.random.uniform(k_x, (num_nodes, in_features), dtype=jnp.float32)
    adj = jnp.eye(num_nodes, dtype=jnp.float32)

    # Deterministic parameter init (nn.Linear-like uniform fan-in scaling).
    def linear_init(kw, kb, fan_in, fan_out):
        bound = 1.0 / (fan_in ** 0.5)
        w = jax.random.uniform(kw, (fan_in, fan_out), jnp.float32, -bound, bound)
        b = jax.random.uniform(kb, (1, fan_out), jnp.float32, -bound, bound)
        return w, b

    w1, b1 = linear_init(k_w1, k_b1, in_features, hidden_features)
    w2, b2 = linear_init(k_w2, k_b2, hidden_features, out_features)

    out = jax.block_until_ready(gcn_forward(x, adj, w1, b1, w2, b2))
    assert out.shape == (num_nodes, out_features)

    # Reference 1: identical bf16-input / f32-accumulate precision path.
    bf16, f32 = jnp.bfloat16, jnp.float32
    adj_b, x_b, w1_b, w2_b = (a.astype(bf16) for a in (adj, x, w1, w2))
    t = jnp.dot(adj_b, x_b, preferred_element_type=f32)
    h = jnp.maximum(jnp.dot(t.astype(bf16), w1_b, preferred_element_type=f32) + b1, 0.0)
    p = jnp.dot(h.astype(bf16), w2_b, preferred_element_type=f32)
    ref_bf16 = jnp.dot(adj_b, p.astype(bf16), preferred_element_type=f32) + b2

    # Reference 2: original full-f32 math (looser tolerance due to bf16 inputs).
    ref_f32 = jnp.maximum(adj @ x @ w1 + b1, 0.0)
    ref_f32 = adj @ ref_f32 @ w2 + b2

    assert jnp.allclose(out, ref_bf16, atol=1e-4, rtol=1e-4), "mismatch vs bf16-path ref"
    assert jnp.allclose(out, ref_f32, atol=3e-2, rtol=3e-2), "mismatch vs f32 ref"

    print("KERNEL_OK")
</pallas_src>

<mosaic_0001>
module attributes {stable_mosaic.version = 11 : i64} {
  func.func @gcn_kernel(%arg0: memref<128x128xbf16, #tpu.memory_space<vmem>>, %arg1: memref<128x128xbf16, #tpu.memory_space<vmem>>, %arg2: memref<128x128xbf16, #tpu.memory_space<vmem>>, %arg3: memref<1x128xf32, #tpu.memory_space<vmem>>, %arg4: memref<128x128xbf16, #tpu.memory_space<vmem>>, %arg5: memref<1x128xf32, #tpu.memory_space<vmem>>, %arg6: memref<128x128xf32, #tpu.memory_space<vmem>>) attributes {dimension_semantics = [], scalar_prefetch = 0 : i64, scratch_operands = 0 : i64, tpu.core_type = #tpu.core_type<tc>} {
    %c0 = arith.constant 0 : index
    %c0_0 = arith.constant 0 : index
    %0 = vector.load %arg0[%c0, %c0_0] : memref<128x128xbf16, #tpu.memory_space<vmem>>, vector<128x128xbf16>
    %c0_1 = arith.constant 0 : index
    %c0_2 = arith.constant 0 : index
    %1 = vector.load %arg1[%c0_1, %c0_2] : memref<128x128xbf16, #tpu.memory_space<vmem>>, vector<128x128xbf16>
    %cst = arith.constant dense<0.000000e+00> : vector<128x128xf32>
    %2 = tpu.matmul %0, %1, %cst {dimension_numbers = #tpu.dot_dimension_numbers<[1], [0], [0], [1], [0, 0, 1, 1], [], []>} : vector<128x128xbf16>, vector<128x128xbf16>, vector<128x128xf32> -> vector<128x128xf32>
    %3 = arith.truncf %2 : vector<128x128xf32> to vector<128x128xbf16>
    %c0_3 = arith.constant 0 : index
    %c0_4 = arith.constant 0 : index
    %4 = vector.load %arg2[%c0_3, %c0_4] : memref<128x128xbf16, #tpu.memory_space<vmem>>, vector<128x128xbf16>
    %cst_5 = arith.constant dense<0.000000e+00> : vector<128x128xf32>
    %5 = tpu.matmul %3, %4, %cst_5 {dimension_numbers = #tpu.dot_dimension_numbers<[1], [0], [0], [1], [0, 0, 1, 1], [], []>} : vector<128x128xbf16>, vector<128x128xbf16>, vector<128x128xf32> -> vector<128x128xf32>
    %c0_6 = arith.constant 0 : index
    %c0_7 = arith.constant 0 : index
    %6 = vector.load %arg3[%c0_6, %c0_7] : memref<1x128xf32, #tpu.memory_space<vmem>>, vector<1x128xf32>
    %7 = vector.broadcast %6 : vector<1x128xf32> to vector<128x128xf32>
    %8 = arith.addf %5, %7 : vector<128x128xf32>
    %cst_8 = arith.constant 0.000000e+00 : f32
    %9 = vector.broadcast %cst_8 : f32 to vector<128x128xf32>
    %10 = arith.maximumf %8, %9 : vector<128x128xf32>
    %11 = arith.truncf %10 : vector<128x128xf32> to vector<128x128xbf16>
    %c0_9 = arith.constant 0 : index
    %c0_10 = arith.constant 0 : index
    %12 = vector.load %arg4[%c0_9, %c0_10] : memref<128x128xbf16, #tpu.memory_space<vmem>>, vector<128x128xbf16>
    %cst_11 = arith.constant dense<0.000000e+00> : vector<128x128xf32>
    %13 = tpu.matmul %11, %12, %cst_11 {dimension_numbers = #tpu.dot_dimension_numbers<[1], [0], [0], [1], [0, 0, 1, 1], [], []>} : vector<128x128xbf16>, vector<128x128xbf16>, vector<128x128xf32> -> vector<128x128xf32>
    %14 = arith.truncf %13 : vector<128x128xf32> to vector<128x128xbf16>
    %cst_12 = arith.constant dense<0.000000e+00> : vector<128x128xf32>
    %15 = tpu.matmul %0, %14, %cst_12 {dimension_numbers = #tpu.dot_dimension_numbers<[1], [0], [0], [1], [0, 0, 1, 1], [], []>} : vector<128x128xbf16>, vector<128x128xbf16>, vector<128x128xf32> -> vector<128x128xf32>
    %c0_13 = arith.constant 0 : index
    %c0_14 = arith.constant 0 : index
    %16 = vector.load %arg5[%c0_13, %c0_14] : memref<1x128xf32, #tpu.memory_space<vmem>>, vector<1x128xf32>
    %17 = vector.broadcast %16 : vector<1x128xf32> to vector<128x128xf32>
    %18 = arith.addf %15, %17 : vector<128x128xf32>
    %c0_15 = arith.constant 0 : index
    %c0_16 = arith.constant 0 : index
    %19 = vector.load %arg6[%c0_15, %c0_16] : memref<128x128xf32, #tpu.memory_space<vmem>>, vector<128x128xf32>
    tpu.vector_store %arg6[%c0_15, %c0_16], %18 {strides = array<i32>} : memref<128x128xf32, #tpu.memory_space<vmem>>, vector<128x128xf32>,
    return
  }
}

</mosaic_0001>

<bundles_post_ra>
// kernel: tpu_custom_call.1
= control target key start
LH: loop header
LB: loop body
LE: loop exit
PB: predicated region body
PF: predicated region fallthrough
CT: control target
= control target key end

     0   :  { %11 = vsyncpa [#allocation3], 0  ;;  %s1297_s0 = inlined_call_operand.hbm [shape: bf16[128,128], index: 0, kind: input, shape index: {}]   ;;  %s1298_s1 = inlined_call_operand.hbm [shape: bf16[128,128], index: 1, kind: input, shape index: {}]   ;;  %s1299_s2 = inlined_call_operand.hbm [shape: bf16[128,128], index: 2, kind: input, shape index: {}]   ;;  %s1300_s3 = inlined_call_operand.vmem [shape: f32[1,128], index: 3, kind: input, shape index: {}]   ;;  %s1301_s4 = inlined_call_operand.hbm [shape: bf16[128,128], index: 4, kind: input, shape index: {}]   ;;  %s1302_s5 = inlined_call_operand.vmem [shape: f32[1,128], index: 5, kind: input, shape index: {}]   ;;  %s1303_s6 = inlined_call_operand.hbm [shape: f32[128,128], index: 6, kind: output, shape index: {}]  }
   0x1   :  { %12 = vsyncpa [#allocation6], 0 }
   0x2   :  { %13 = vsyncpa [#allocation9], 0 }
   0x3   :  { %14 = vsyncpa [#allocation4], 0  ;;  %s1188_s21 = smov [#allocation5]   ;;  %s1189_s23 = smov [#allocation2]  }
   0x4   :  { %s32_s22 = sshll.u32 %s1188_s21, 4  ;;  %s20_s24 = sshll.u32 %s1189_s23, 4  ;;  %s33_s22 = int_to_ptr.vmem [resolvable:$true] %s32_s22  ;;  %s21_s24 = int_to_ptr.vmem [resolvable:$true] %s20_s24 }
   0x5   :  { %s1088_s25 = scalar_lea.vmem %s33_s22, 1024  ;;  %p1093_p1 = scmp.lt.s32.totalorder %s33_s22, %s33_s22 }
   0x6   :  { %p1089_p0 = scmp.ne.s32.totalorder %s33_s22, %s1088_s25  ;;  %p1094_p2 = scmp.lt.s32.totalorder %s1088_s25, %s1088_s25 }
   0x8   :  { %p1095_p3 = por %p1094_p2, %p1093_p1 }
   0xa   :  { %p1096_p4 = pnand %p1095_p3, %p1089_p0 }
   0xc   :  { %1099 = shalt.err (!%p1096_p4)
}
   0xd   :  { %s1190_s26 = smov 64   ;;  %s1191_s27 = smov 4  }
   0xe   :  { %38 = dma.hbm_to_vmem [thread:$0]  %s1298_s1, 1024, %s33_s22, [#allocation6], %s1190_s26, %s1190_s26, %s1191_s27  }
   0xf   :  { %s1108_s30 = scalar_lea.vmem %s21_s24, 1024  ;;  %p1113_p6 = scmp.lt.s32.totalorder %s21_s24, %s21_s24 }
  0x10   :  { %p1109_p5 = scmp.ne.s32.totalorder %s21_s24, %s1108_s30  ;;  %p1114_p7 = scmp.lt.s32.totalorder %s1108_s30, %s1108_s30 }
  0x12   :  { %p1115_p8 = por %p1114_p7, %p1113_p6 }
  0x14   :  { %p1116_p9 = pnand %p1115_p8, %p1109_p5 }
  0x16   :  { %1119 = shalt.err (!%p1116_p9)
}
  0x17   :  { %26 = dma.hbm_to_vmem [thread:$0]  %s1297_s0, 1024, %s21_s24, [#allocation3], %s1190_s26, %s1190_s26, %s1191_s27  }
  0x18   :  { %s1192_s9 = smov [#allocation7]   ;;  %s1193_s11 = smov [#allocation8]  }
  0x19   :  { %s44_s10 = sshll.u32 %s1192_s9, 4  ;;  %s58_s12 = sshll.u32 %s1193_s11, 4  ;;  %s45_s10 = int_to_ptr.vmem [resolvable:$true] %s44_s10  ;;  %s59_s12 = int_to_ptr.vmem [resolvable:$true] %s58_s12 }
  0x1a   :  { %s1128_s1 = scalar_lea.vmem %s45_s10, 1024  ;;  %p1133_p11 = scmp.lt.s32.totalorder %s45_s10, %s45_s10 }
  0x1b   :  { %p1129_p10 = scmp.ne.s32.totalorder %s45_s10, %s1128_s1  ;;  %p1134_p12 = scmp.lt.s32.totalorder %s1128_s1, %s1128_s1 }
  0x1d   :  { %p1135_p13 = por %p1134_p12, %p1133_p11 }
  0x1f   :  { %p1136_p0 = pnand %p1135_p13, %p1129_p10 }
  0x21   :  { %1139 = shalt.err (!%p1136_p0)
}
  0x22   :  { %50 = dma.hbm_to_vmem [thread:$0]  %s1299_s2, 1024, %s45_s10, [#allocation6], %s1190_s26, %s1190_s26, %s1191_s27  }
  0x23   :  { %s1148_s0 = scalar_lea.vmem %s59_s12, 1024  ;;  %p1153_p2 = scmp.lt.s32.totalorder %s59_s12, %s59_s12 }
  0x24   :  { %p1149_p1 = scmp.ne.s32.totalorder %s59_s12, %s1148_s0  ;;  %p1154_p3 = scmp.lt.s32.totalorder %s1148_s0, %s1148_s0 }
  0x26   :  { %p1155_p4 = por %p1154_p3, %p1153_p2 }
  0x28   :  { %p1156_p5 = pnand %p1155_p4, %p1149_p1 }
  0x2a   :  { %1159 = shalt.err (!%p1156_p5)
}
  0x2b   :  { %64 = dma.hbm_to_vmem [thread:$0]  %s1301_s4, 1024, %s59_s12, [#allocation9], %s1190_s26, %s1190_s26, %s1191_s27  }
  0x2c   :  { %1180 = dma.done.wait [#allocation3], 1024  }
  0x2d   :  { %1181 = vsyncadd [#allocation3], 4294966272 }
  0x2e   :  { %1182 = dma.done.wait [#allocation6], 2048  }
  0x2f   :  { %1183 = vsyncadd [#allocation6], 4294965248 }
  0x30   :  { %1184 = dma.done.wait [#allocation9], 1024  }
  0x31   :  { %1185 = vsyncadd [#allocation9], 4294966272  ;;  %v1048_v0 = vld [vmem:[#allocation5 + $0x38] sm:$0xff]   ;;  %v1049_v1 = vld [vmem:[#allocation5 + $0x30] sm:$0xff]  }
  0x32   :  { %911 = vmatprep.subr.bf16.mxu0 %v1048_v0  ;;  %v1050_v2 = vld [vmem:[#allocation5 + $0x28] sm:$0xff]   ;;  %v1051_v3 = vld [vmem:[#allocation5 + $0x20] sm:$0xff]   ;;  %v1052_v5 = vld [vmem:[#allocation5 + $0x18] sm:$0xff]  }
  0x33   :  { %912 = vmatpush3.bf16.msra.mxu0 %v1048_v0  ;;  %v1256_v4 = vld [vmem:[#allocation2] sm:$0xff]   ;;  %v1053_v6 = vld [vmem:[#allocation5 + $0x10] sm:$0xff]   ;;  %v1064_v7 = vld [vmem:[#allocation7 + $0x38] sm:$0xff]  }
  0x34   :  { %913 = vmatprep.subr.bf16.mxu0 %v1049_v1  ;;  %927 = vmatprep.mubr.bf16.mxu0 %v1256_v4  ;;  %v1065_v8 = vld [vmem:[#allocation7 + $0x30] sm:$0xff]   ;;  %v1054_v9 = vld [vmem:[#allocation5 + $0x8] sm:$0xff]   ;;  %v1055_v11 = vld [vmem:[#allocation5] sm:$0xff]  }
  0x35   :  { %943 = vmatprep.subr.bf16.mxu1 %v1064_v7  ;;  %v1066_v10 = vld [vmem:[#allocation7 + $0x28] sm:$0xff]   ;;  %v1067_v12 = vld [vmem:[#allocation7 + $0x20] sm:$0xff]   ;;  %v1068_v13 = vld [vmem:[#allocation7 + $0x18] sm:$0xff]  }
  0x36   :  { %944 = vmatpush3.bf16.msra.mxu1 %v1064_v7  ;;  %v1259_v14 = vld [vmem:[#allocation2 + $0x8] sm:$0xff]   ;;  %v1261_v15 = vld [vmem:[#allocation2 + $0x10] sm:$0xff]   ;;  %v1265_v17 = vld [vmem:[#allocation2 + $0x18] sm:$0xff]  }
  0x37   :  { %914 = vmatpush3.bf16.msra.mxu0 %v1049_v1  ;;  %945 = vmatprep.subr.bf16.mxu1 %v1065_v8  ;;  %v1069_v16 = vld [vmem:[#allocation7 + $0x10] sm:$0xff]   ;;  %v1267_v18 = vld [vmem:[#allocation2 + $0x20] sm:$0xff]   ;;  %v1271_v19 = vld [vmem:[#allocation2 + $0x28] sm:$0xff]  }
  0x38   :  { %915 = vmatprep.subr.bf16.mxu0 %v1050_v2  ;;  %v1273_v20 = vld [vmem:[#allocation2 + $0x30] sm:$0xff]   ;;  %v1277_v21 = vld [vmem:[#allocation2 + $0x38] sm:$0xff]   ;;  %v1070_v22 = vld [vmem:[#allocation7 + $0x8] sm:$0xff]  }
  0x39   :  { %v1071_v23 = vld [vmem:[#allocation7] sm:$0xff]   ;;  %v1072_v24 = vld [vmem:[#allocation8 + $0x38] sm:$0xff]   ;;  %v1073_v25 = vld [vmem:[#allocation8 + $0x30] sm:$0xff]  }
  0x3a   :  { %946 = vmatpush3.bf16.msra.mxu1 %v1065_v8  ;;  %v1074_v26 = vld [vmem:[#allocation8 + $0x28] sm:$0xff]   ;;  %v1075_v27 = vld [vmem:[#allocation8 + $0x20] sm:$0xff]   ;;  %v1076_v28 = vld [vmem:[#allocation8 + $0x18] sm:$0xff]  }
  0x3b   :  { %916 = vmatpush3.bf16.msra.mxu0 %v1050_v2  ;;  %947 = vmatprep.subr.bf16.mxu1 %v1066_v10  ;;  %v1077_v53 = vld [vmem:[#allocation8 + $0x10] sm:$0xff]   ;;  %v1078_v54 = vld [vmem:[#allocation8 + $0x8] sm:$0xff]   ;;  %v1079_v55 = vld [vmem:[#allocation8] sm:$0xff]  }
  0x3c   :  { %917 = vmatprep.subr.bf16.mxu0 %v1051_v3  ;;  %v829_v58 = vld [vmem:[%s1300_s3] ss:$0 sm:$0xff] }
  0x3e   :  { %948 = vmatpush3.bf16.msra.mxu1 %v1066_v10 }
  0x3f   :  { %918 = vmatpush3.bf16.msra.mxu0 %v1051_v3  ;;  %949 = vmatprep.subr.bf16.mxu1 %v1067_v12 }
  0x40   :  { %919 = vmatprep.subr.bf16.mxu0 %v1052_v5 }
  0x42   :  { %950 = vmatpush3.bf16.msra.mxu1 %v1067_v12 }
  0x43   :  { %920 = vmatpush3.bf16.msra.mxu0 %v1052_v5  ;;  %951 = vmatprep.subr.bf16.mxu1 %v1068_v13 }
  0x44   :  { %921 = vmatprep.subr.bf16.mxu0 %v1053_v6 }
  0x46   :  { %952 = vmatpush3.bf16.msra.mxu1 %v1068_v13 }
  0x47   :  { %922 = vmatpush3.bf16.msra.mxu0 %v1053_v6  ;;  %953 = vmatprep.subr.bf16.mxu1 %v1069_v16 }
  0x48   :  { %923 = vmatprep.subr.bf16.mxu0 %v1054_v9 }
  0x4a   :  { %954 = vmatpush3.bf16.msra.mxu1 %v1069_v16 }
  0x4b   :  { %924 = vmatpush3.bf16.msra.mxu0 %v1054_v9  ;;  %955 = vmatprep.subr.bf16.mxu1 %v1070_v22 }
  0x4c   :  { %925 = vmatprep.subr.bf16.mxu0 %v1055_v11 }
  0x4e   :  { %956 = vmatpush3.bf16.msra.mxu1 %v1070_v22 }
  0x4f   :  { %926 = vmatpush3.bf16.msra.mxu0 %v1055_v11  ;;  %957 = vmatprep.subr.bf16.mxu1 %v1071_v23 }
  0x50   :  { %975 = vmatprep.subr.bf16.mxu0 %v1072_v24 }
  0x52   :  { %928 = vmatmul.mubr.bf16.vlgmr.msra.gmra.mxu0 %v1259_v14  ;;  %958 = vmatpush3.bf16.msra.mxu1 %v1071_v23 }
  0x53   :  { %931 = vmatprep.mubr.bf16.mxu0 %v1261_v15  ;;  %976 = vmatpush3.bf16.msra.mxu0 %v1072_v24 }
  0x54   :  { %977 = vmatprep.subr.bf16.mxu0 %v1073_v25 }
  0x57   :  { %978 = vmatpush3.bf16.msra.mxu0 %v1073_v25 }
  0x58   :  { %979 = vmatprep.subr.bf16.mxu0 %v1074_v26 }
  0x5a   :  { %932 = vmatmul.mubr.bf16.gmra.mxu0 %v1265_v17 }
  0x5b   :  { %935 = vmatprep.mubr.bf16.mxu0 %v1267_v18  ;;  %980 = vmatpush3.bf16.msra.mxu0 %v1074_v26 }
  0x5c   :  { %981 = vmatprep.subr.bf16.mxu0 %v1075_v27 }
  0x5f   :  { %982 = vmatpush3.bf16.msra.mxu0 %v1075_v27 }
  0x60   :  { %983 = vmatprep.subr.bf16.mxu0 %v1076_v28 }
  0x62   :  { %936 = vmatmul.mubr.bf16.gmra.mxu0 %v1271_v19 }
  0x63   :  { %939 = vmatprep.mubr.bf16.mxu0 %v1273_v20  ;;  %984 = vmatpush3.bf16.msra.mxu0 %v1076_v28 }
  0x64   :  { %985 = vmatprep.subr.bf16.mxu0 %v1077_v53 }
  0x67   :  { %986 = vmatpush3.bf16.msra.mxu0 %v1077_v53 }
  0x68   :  { %987 = vmatprep.subr.bf16.mxu0 %v1078_v54 }
  0x6a   :  { %940 = vmatmul.mubr.bf16.gmra.mxu0 %v1277_v21 }
  0x6b   :  { %988 = vmatpush3.bf16.msra.mxu0 %v1078_v54 }
  0x6c   :  { %989 = vmatprep.subr.bf16.mxu0 %v1079_v55 }
  0x6f   :  { %990 = vmatpush3.bf16.msra.mxu0 %v1079_v55 }
 0x112   :  { %v929_v29 = vpop.f32.mrf.mxu0 }
 0x114   :  { %v242_v30 = vpop.f32.mrf.mxu0 }
 0x116   :  { %v930_v31 = vpop.f32.mrf.mxu0 }
 0x117   :  { %v306_v34 = vpack.c.bf16 %v930_v31, %v929_v29 }
 0x118   :  { %v245_v32 = vpop.f32.mrf.mxu0 }
 0x119   :  { %v305_v33 = vpack.c.bf16 %v245_v32, %v242_v30 }
 0x11a   :  { %v933_v35 = vpop.f32.mrf.mxu0 }
 0x11b   :  { %959 = vmatprep.mubr.bf16.mxu1 %v305_v33 }
 0x11c   :  { %v258_v36 = vpop.f32.mrf.mxu0  ;;  %960 = vmatmul.mubr.bf16.vlgmr.msra.gmra.mxu1 %v306_v34 }
 0x11e   :  { %v934_v37 = vpop.f32.mrf.mxu0 }
 0x11f   :  { %v308_v40 = vpack.c.bf16 %v934_v37, %v933_v35 }
 0x120   :  { %v261_v38 = vpop.f32.mrf.mxu0 }
 0x121   :  { %v307_v39 = vpack.c.bf16 %v261_v38, %v258_v36 }
 0x122   :  { %v937_v41 = vpop.f32.mrf.mxu0 }
 0x123   :  { %963 = vmatprep.mubr.bf16.mxu1 %v307_v39 }
 0x124   :  { %v274_v42 = vpop.f32.mrf.mxu0  ;;  %964 = vmatmul.mubr.bf16.gmra.mxu1 %v308_v40 }
 0x126   :  { %v938_v43 = vpop.f32.mrf.mxu0 }
 0x127   :  { %v310_v46 = vpack.c.bf16 %v938_v43, %v937_v41 }
 0x128   :  { %v277_v44 = vpop.f32.mrf.mxu0 }
 0x129   :  { %v309_v45 = vpack.c.bf16 %v277_v44, %v274_v42 }
 0x12a   :  { %v941_v47 = vpop.f32.mrf.mxu0 }
 0x12b   :  { %967 = vmatprep.mubr.bf16.mxu1 %v309_v45 }
 0x12c   :  { %v290_v48 = vpop.f32.mrf.mxu0  ;;  %968 = vmatmul.mubr.bf16.gmra.mxu1 %v310_v46 }
 0x12e   :  { %v942_v49 = vpop.f32.mrf.mxu0 }
 0x12f   :  { %v312_v52 = vpack.c.bf16 %v942_v49, %v941_v47 }
 0x130   :  { %v293_v50 = vpop.f32.mrf.mxu0 }
 0x131   :  { %v311_v51 = vpack.c.bf16 %v293_v50, %v290_v48 }
 0x133   :  { %971 = vmatprep.mubr.bf16.mxu1 %v311_v51 }
 0x134   :  { %972 = vmatmul.mubr.bf16.gmra.mxu1 %v312_v52 }
 0x135   :  { %1023 = vmatprep.mubr.bf16.mxu1 %v1256_v4 }
 0x1dc   :  { %v961_v56 = vpop.f32.mrf.mxu1 }
 0x1dd   :  { %v427_v62 = vadd.f32 %v961_v56, %v829_v58 }
 0x1de   :  { %v418_v57 = vpop.f32.mrf.mxu1 }
 0x1df   :  { %v419_v60 = vadd.f32 %v829_v58, %v418_v57  ;;  %v483_v5 = vmax.f32 %v427_v62, 0.0 }
 0x1e0   :  { %v962_v59 = vpop.f32.mrf.mxu1 }
 0x1e1   :  { %v430_v61 = vadd.f32 %v962_v59, %v829_v58  ;;  %v481_v3 = vmax.f32 %v419_v60, 0.0 }
 0x1e2   :  { %v421_v63 = vpop.f32.mrf.mxu1 }
 0x1e3   :  { %v422_v0 = vadd.f32 %v829_v58, %v421_v63  ;;  %v484_v1 = vmax.f32 %v430_v61, 0.0 }
 0x1e4   :  { %v965_v2 = vpop.f32.mrf.mxu1 }
 0x1e5   :  { %v482_v4 = vmax.f32 %v422_v0, 0.0  ;;  %v498_v8 = vpack.c.bf16 %v484_v1, %v483_v5  ;;  %v443_v12 = vadd.f32 %v965_v2, %v829_v58 }
 0x1e6   :  { %v434_v6 = vpop.f32.mrf.mxu1 }
 0x1e7   :  { %v497_v7 = vpack.c.bf16 %v482_v4, %v481_v3  ;;  %v435_v10 = vadd.f32 %v829_v58, %v434_v6  ;;  %v487_v26 = vmax.f32 %v443_v12, 0.0 }
 0x1e8   :  { %v966_v9 = vpop.f32.mrf.mxu1 }
 0x1e9   :  { %v446_v11 = vadd.f32 %v966_v9, %v829_v58  ;;  %991 = vmatprep.mubr.bf16.mxu0 %v497_v7  ;;  %v485_v24 = vmax.f32 %v435_v10, 0.0 }
 0x1ea   :  { %v437_v13 = vpop.f32.mrf.mxu1  ;;  %992 = vmatmul.mubr.bf16.vlgmr.msra.gmra.mxu0 %v498_v8 }
 0x1eb   :  { %v438_v16 = vadd.f32 %v829_v58, %v437_v13  ;;  %v488_v22 = vmax.f32 %v446_v11, 0.0 }
 0x1ec   :  { %v969_v23 = vpop.f32.mrf.mxu1 }
 0x1ed   :  { %v486_v25 = vmax.f32 %v438_v16, 0.0  ;;  %v500_v29 = vpack.c.bf16 %v488_v22, %v487_v26  ;;  %v459_v33 = vadd.f32 %v969_v23, %v829_v58  ;;  %v846_v23 = vld [vmem:[%s1302_s5] ss:$0 sm:$0xff]  ;;  %s1194_s5 = smov [#allocation10]  }
 0x1ee   :  { %v450_v27 = vpop.f32.mrf.mxu1  ;;  %s799_s18 = sshll.u32 %s1194_s5, 4  ;;  %s800_s18 = int_to_ptr.vmem [resolvable:$true] %s799_s18 }
 0x1ef   :  { %v499_v28 = vpack.c.bf16 %v486_v25, %v485_v24  ;;  %v451_v31 = vadd.f32 %v829_v58, %v450_v27  ;;  %v491_v40 = vmax.f32 %v459_v33, 0.0  ;;  %s1160_s19 = scalar_lea.vmem %s800_s18, 2048  ;;  %p1165_p7 = scmp.lt.s32.totalorder %s800_s18, %s800_s18 }
 0x1f0   :  { %v970_v30 = vpop.f32.mrf.mxu1  ;;  %p1161_p6 = scmp.ne.s32.totalorder %s800_s18, %s1160_s19  ;;  %p1166_p8 = scmp.lt.s32.totalorder %s1160_s19, %s1160_s19 }
 0x1f1   :  { %v462_v32 = vadd.f32 %v970_v30, %v829_v58  ;;  %995 = vmatprep.mubr.bf16.mxu0 %v499_v28  ;;  %v489_v38 = vmax.f32 %v451_v31, 0.0 }
 0x1f2   :  { %v453_v34 = vpop.f32.mrf.mxu1  ;;  %996 = vmatmul.mubr.bf16.gmra.mxu0 %v500_v29  ;;  %p1167_p9 = por %p1166_p8, %p1165_p7 }
 0x1f3   :  { %v454_v35 = vadd.f32 %v829_v58, %v453_v34  ;;  %v492_v36 = vmax.f32 %v462_v32, 0.0 }
 0x1f4   :  { %v973_v37 = vpop.f32.mrf.mxu1  ;;  %p1168_p10 = pnand %p1167_p9, %p1161_p6 }
 0x1f5   :  { %v490_v39 = vmax.f32 %v454_v35, 0.0  ;;  %v502_v43 = vpack.c.bf16 %v492_v36, %v491_v40  ;;  %v475_v47 = vadd.f32 %v973_v37, %v829_v58 }
 0x1f6   :  { %v466_v41 = vpop.f32.mrf.mxu1 }
 0x1f7   :  { %v501_v42 = vpack.c.bf16 %v490_v39, %v489_v38  ;;  %v467_v45 = vadd.f32 %v829_v58, %v466_v41  ;;  %v495_v53 = vmax.f32 %v475_v47, 0.0 }
 0x1f8   :  { %v974_v44 = vpop.f32.mrf.mxu1 }
 0x1f9   :  { %v478_v46 = vadd.f32 %v974_v44, %v829_v58  ;;  %999 = vmatprep.mubr.bf16.mxu0 %v501_v42  ;;  %v493_v51 = vmax.f32 %v467_v45, 0.0 }
 0x1fa   :  { %v469_v48 = vpop.f32.mrf.mxu1  ;;  %1000 = vmatmul.mubr.bf16.gmra.mxu0 %v502_v43 }
 0x1fb   :  { %v470_v49 = vadd.f32 %v829_v58, %v469_v48  ;;  %v496_v50 = vmax.f32 %v478_v46, 0.0 }
 0x1fd   :  { %v494_v52 = vmax.f32 %v470_v49, 0.0  ;;  %v504_v55 = vpack.c.bf16 %v496_v50, %v495_v53 }
 0x1ff   :  { %v503_v54 = vpack.c.bf16 %v494_v52, %v493_v51 }
 0x201   :  { %1003 = vmatprep.mubr.bf16.mxu0 %v503_v54 }
 0x202   :  { %1004 = vmatmul.mubr.bf16.gmra.mxu0 %v504_v55 }
 0x2aa   :  { %v993_v56 = vpop.f32.mrf.mxu0 }
 0x2ac   :  { %v603_v57 = vpop.f32.mrf.mxu0 }
 0x2ae   :  { %v994_v59 = vpop.f32.mrf.mxu0 }
 0x2af   :  { %v667_v16 = vpack.c.bf16 %v994_v59, %v993_v56 }
 0x2b0   :  { %v606_v60 = vpop.f32.mrf.mxu0 }
 0x2b1   :  { %v666_v22 = vpack.c.bf16 %v606_v60, %v603_v57 }
 0x2b2   :  { %v997_v61 = vpop.f32.mrf.mxu0 }
 0x2b4   :  { %v619_v62 = vpop.f32.mrf.mxu0 }
 0x2b6   :  { %v998_v63 = vpop.f32.mrf.mxu0 }
 0x2b7   :  { %v669_v12 = vpack.c.bf16 %v998_v63, %v997_v61 }
 0x2b8   :  { %v622_v0 = vpop.f32.mrf.mxu0 }
 0x2b9   :  { %v668_v13 = vpack.c.bf16 %v622_v0, %v619_v62 }
 0x2ba   :  { %v1001_v1 = vpop.f32.mrf.mxu0 }
 0x2bc   :  { %v635_v2 = vpop.f32.mrf.mxu0 }
 0x2be   :  { %v1002_v3 = vpop.f32.mrf.mxu0 }
 0x2bf   :  { %v671_v10 = vpack.c.bf16 %v1002_v3, %v1001_v1 }
 0x2c0   :  { %v638_v58 = vpop.f32.mrf.mxu0 }
 0x2c1   :  { %v670_v11 = vpack.c.bf16 %v638_v58, %v635_v2 }
 0x2c2   :  { %v1005_v4 = vpop.f32.mrf.mxu0 }
 0x2c4   :  { %v651_v5 = vpop.f32.mrf.mxu0 }
 0x2c6   :  { %v1006_v6 = vpop.f32.mrf.mxu0 }
 0x2c7   :  { %v673_v7 = vpack.c.bf16 %v1006_v6, %v1005_v4 }
 0x2c8   :  { %v654_v8 = vpop.f32.mrf.mxu0 }
 0x2c9   :  { %v672_v9 = vpack.c.bf16 %v654_v8, %v651_v5  ;;  %1007 = vmatprep.subr.bf16.mxu1 %v673_v7 }
 0x2ca   :  { %1008 = vmatpush3.bf16.msra.mxu1 %v673_v7 }
 0x2cb   :  { %1009 = vmatprep.subr.bf16.mxu1 %v672_v9 }
 0x2ce   :  { %1010 = vmatpush3.bf16.msra.mxu1 %v672_v9 }
 0x2cf   :  { %1011 = vmatprep.subr.bf16.mxu1 %v671_v10 }
 0x2d2   :  { %1012 = vmatpush3.bf16.msra.mxu1 %v671_v10 }
 0x2d3   :  { %1013 = vmatprep.subr.bf16.mxu1 %v670_v11 }
 0x2d6   :  { %1014 = vmatpush3.bf16.msra.mxu1 %v670_v11 }
 0x2d7   :  { %1015 = vmatprep.subr.bf16.mxu1 %v669_v12 }
 0x2da   :  { %1016 = vmatpush3.bf16.msra.mxu1 %v669_v12 }
 0x2db   :  { %1017 = vmatprep.subr.bf16.mxu1 %v668_v13 }
 0x2de   :  { %1018 = vmatpush3.bf16.msra.mxu1 %v668_v13 }
 0x2df   :  { %1019 = vmatprep.subr.bf16.mxu1 %v667_v16 }
 0x2e2   :  { %1020 = vmatpush3.bf16.msra.mxu1 %v667_v16 }
 0x2e3   :  { %1021 = vmatprep.subr.bf16.mxu1 %v666_v22 }
 0x2e6   :  { %1022 = vmatpush3.bf16.msra.mxu1 %v666_v22 }
 0x2e9   :  { %1024 = vmatmul.mubr.bf16.vlgmr.msra.gmra.mxu1 %v1259_v14 }
 0x2ea   :  { %1027 = vmatprep.mubr.bf16.mxu1 %v1261_v15 }
 0x2f1   :  { %1028 = vmatmul.mubr.bf16.gmra.mxu1 %v1265_v17 }
 0x2f2   :  { %1031 = vmatprep.mubr.bf16.mxu1 %v1267_v18 }
 0x2f9   :  { %1032 = vmatmul.mubr.bf16.gmra.mxu1 %v1271_v19 }
 0x2fa   :  { %1035 = vmatprep.mubr.bf16.mxu1 %v1273_v20 }
 0x301   :  { %1036 = vmatmul.mubr.bf16.gmra.mxu1 %v1277_v21 }
 0x3a9   :  { %v1025_v24 = vpop.f32.mrf.mxu1 }
 0x3aa   :  { %v724_v25 = vadd.f32 %v1025_v24, %v846_v23 }
 0x3ab   :  { %v715_v26 = vpop.f32.mrf.mxu1 }
 0x3ac   :  { %780 = vst [vmem:[#allocation10 + $0x10] sm:$0xff] %v724_v25  ;;  %v716_v14 = vadd.f32 %v846_v23, %v715_v26 }
 0x3ad   :  { %v1026_v15 = vpop.f32.mrf.mxu1 }
 0x3ae   :  { %778 = vst [vmem:[#allocation10] sm:$0xff] %v716_v14  ;;  %v727_v17 = vadd.f32 %v1026_v15, %v846_v23 }
 0x3af   :  { %v718_v27 = vpop.f32.mrf.mxu1 }
 0x3b0   :  { %781 = vst [vmem:[#allocation10 + $0x18] sm:$0xff] %v727_v17  ;;  %v719_v18 = vadd.f32 %v846_v23, %v718_v27 }
 0x3b1   :  { %v1029_v19 = vpop.f32.mrf.mxu1 }
 0x3b2   :  { %779 = vst [vmem:[#allocation10 + $0x8] sm:$0xff] %v719_v18  ;;  %v740_v20 = vadd.f32 %v1029_v19, %v846_v23 }
 0x3b3   :  { %v731_v28 = vpop.f32.mrf.mxu1 }
 0x3b4   :  { %784 = vst [vmem:[#allocation10 + $0x30] sm:$0xff] %v740_v20  ;;  %v732_v21 = vadd.f32 %v846_v23, %v731_v28 }
 0x3b5   :  { %v1030_v29 = vpop.f32.mrf.mxu1 }
 0x3b6   :  { %782 = vst [vmem:[#allocation10 + $0x20] sm:$0xff] %v732_v21  ;;  %v743_v30 = vadd.f32 %v1030_v29, %v846_v23 }
 0x3b7   :  { %v734_v31 = vpop.f32.mrf.mxu1 }
 0x3b8   :  { %785 = vst [vmem:[#allocation10 + $0x38] sm:$0xff] %v743_v30  ;;  %v735_v32 = vadd.f32 %v846_v23, %v734_v31 }
 0x3b9   :  { %v1033_v33 = vpop.f32.mrf.mxu1 }
 0x3ba   :  { %783 = vst [vmem:[#allocation10 + $0x28] sm:$0xff] %v735_v32  ;;  %v756_v34 = vadd.f32 %v1033_v33, %v846_v23 }
 0x3bb   :  { %v747_v35 = vpop.f32.mrf.mxu1 }
 0x3bc   :  { %788 = vst [vmem:[#allocation10 + $0x50] sm:$0xff] %v756_v34  ;;  %v748_v36 = vadd.f32 %v846_v23, %v747_v35 }
 0x3bd   :  { %v1034_v37 = vpop.f32.mrf.mxu1 }
 0x3be   :  { %786 = vst [vmem:[#allocation10 + $0x40] sm:$0xff] %v748_v36  ;;  %v759_v38 = vadd.f32 %v1034_v37, %v846_v23 }
 0x3bf   :  { %v750_v39 = vpop.f32.mrf.mxu1 }
 0x3c0   :  { %789 = vst [vmem:[#allocation10 + $0x58] sm:$0xff] %v759_v38  ;;  %v751_v40 = vadd.f32 %v846_v23, %v750_v39 }
 0x3c1   :  { %v1037_v41 = vpop.f32.mrf.mxu1 }
 0x3c2   :  { %787 = vst [vmem:[#allocation10 + $0x48] sm:$0xff] %v751_v40  ;;  %v772_v42 = vadd.f32 %v1037_v41, %v846_v23 }
 0x3c3   :  { %v763_v43 = vpop.f32.mrf.mxu1 }
 0x3c4   :  { %792 = vst [vmem:[#allocation10 + $0x70] sm:$0xff] %v772_v42  ;;  %v764_v44 = vadd.f32 %v846_v23, %v763_v43 }
 0x3c5   :  { %v1038_v45 = vpop.f32.mrf.mxu1 }
 0x3c6   :  { %790 = vst [vmem:[#allocation10 + $0x60] sm:$0xff] %v764_v44  ;;  %v775_v46 = vadd.f32 %v1038_v45, %v846_v23 }
 0x3c7   :  { %v766_v47 = vpop.f32.mrf.mxu1 }
 0x3c8   :  { %793 = vst [vmem:[#allocation10 + $0x78] sm:$0xff] %v775_v46  ;;  %v767_v48 = vadd.f32 %v846_v23, %v766_v47 }
 0x3ca   :  { %791 = vst [vmem:[#allocation10 + $0x68] sm:$0xff] %v767_v48 }
 0x3cb   :  { %1171 = shalt.err (!%p1168_p10)
}
 0x3cc   :  { %s1195_s20 = smov 128   ;;  %s1196_s21 = smov 8  }
 0x3cd   :  { %805 = dma.vmem_to_hbm [thread:$0]  %s800_s18, 2048, %s1303_s6, [#allocation4], %s1195_s20, %s1195_s20, %s1196_s21  }
 0x3ce   :  { %1186 = dma.done.wait [#allocation4], 2048  }
 0x3cf   :  { %1187 = vsyncadd [#allocation4], 4294965248 }
 0x3d0   :  { %809 = vsyncpa [#allocation3], 1 }
 0x3d1   :  { %810 = vsyncpa [#allocation6], 1 }
 0x3d2   :  { %811 = vsyncpa [#allocation9], 1 }
 0x3d3   :  { %812 = vsyncpa [#allocation4], 1 }

</bundles_post_ra>
